<compile_context>
chip_gen: v7x
topology: tpu7x:2x2x1
jax: 0.10.0
libtpu: 0.0.40
codegen_flags: <defaults>
</compile_context>

<pallas_src>
import functools

import jax
import jax.numpy as jnp
from jax.experimental import pallas as pl
from jax.experimental.pallas import tpu as pltpu


def _round_up(n, m=128):
    return ((n + m - 1) // m) * m


# -----------------------------------------------------------------------------
# Kernel: one fused forward pass.  Biases are pre-folded into the weights, so
# the body is exactly three MXU dots plus cheap VPU/XLU glue.
# -----------------------------------------------------------------------------
def lisa_kernel(BB, P, S, patches_ref, qemb_ref, w_img_ref, w_fuse_ref,
                pos_ref, w_out_ref, out_ref):
    Hp = w_img_ref.shape[1]
    Dp = qemb_ref.shape[1]

    # image encoder: patch-embed "conv" with b_img folded via the ones-column
    # in `patches` (1 MXU dot) + ReLU.
    img_h = jnp.maximum(
        jnp.dot(patches_ref[...], w_img_ref[...],
                preferred_element_type=jnp.float32), 0.0)              # [BB*P, Hp]

    # mean pools as sublane reductions (VPU/XLU slots are idle; keeps the MXU
    # chain short and drops the old pool_img/pool_q constant operands).
    img_feat = jnp.sum(img_h.reshape(BB, P, Hp), axis=1) * (1.0 / P)   # [BB, Hp]
    q_feat = jnp.sum(qemb_ref[...].astype(jnp.float32).reshape(BB, S, Dp),
                     axis=1) * (1.0 / S)                               # [BB, Dp]

    # fusion: concat([img_feat, q_feat]) @ [w_fi; w_fq] as ONE K=Hp+Dp dot.
    # b_f is folded into the w_fuse row that multiplies img_feat's ones-lane.
    cat = jnp.concatenate([img_feat, q_feat], axis=-1).astype(jnp.bfloat16)
    fused = jnp.maximum(
        jnp.dot(cat, w_fuse_ref[...], preferred_element_type=jnp.float32),
        0.0)                                                           # [BB, Hp]

    # text head: broadcast fused over the S decode positions on the VPU
    # (replaces the old `expand` matmul), add positional queries, ReLU, then a
    # single output dot; b_out folded via the ones-lane carried in `pos`.
    dec = jnp.maximum(fused[:, None, :] + pos_ref[...][None, :, :], 0.0)
    dec = dec.reshape(BB * S, Hp).astype(jnp.bfloat16)                 # [BB*S, Hp]
    out_ref[...] = jnp.dot(dec, w_out_ref[...],
                           preferred_element_type=jnp.float32)         # [BB*S, Vp]


# -----------------------------------------------------------------------------
# One-time constant preparation (hoisted out of the per-call forward path).
# All biases are folded into the weight matrices; everything is lane-padded to
# multiples of 128 and cast to bf16 for the MXU.
# -----------------------------------------------------------------------------
def make_lisa_constants(params, *, patch=4):
    f32, bf16 = jnp.float32, jnp.bfloat16

    emb = jnp.asarray(params["emb"], f32)
    w_img = jnp.asarray(params["w_img"], f32)
    b_img = jnp.asarray(params["b_img"], f32).reshape(1, -1)
    w_fi = jnp.asarray(params["w_fi"], f32)
    w_fq = jnp.asarray(params["w_fq"], f32)
    b_f = jnp.asarray(params["b_f"], f32).reshape(-1)
    pos = jnp.asarray(params["pos"], f32)
    w_out = jnp.asarray(params["w_out"], f32)
    b_out = jnp.asarray(params["b_out"], f32).reshape(1, -1)

    PD, Hd = w_img.shape
    D = emb.shape[1]
    S = pos.shape[0]
    V = w_out.shape[1]

    PDp = _round_up(PD + 1)   # +1: ones-column in patches for bias folding
    Hp = _round_up(Hd + 1)    # +1: unused lane Hd carries the constant "1"
    Dp = _round_up(D)
    Vp = _round_up(V)

    def pad2(x, r, c):
        return jnp.pad(x, ((0, r - x.shape[0]), (0, c - x.shape[1])))

    # b_img folded: patches carry a 1 in column PD; row PD of w_img carries
    # b_img plus a 1 in (unused) lane Hd so img_feat[:, Hd] == 1 downstream.
    bias_row = pad2(b_img, 1, Hp).at[0, Hd].set(1.0)
    w_img_p = pad2(w_img, PDp, Hp).at[PD, :].set(bias_row[0])

    # fusion weights stacked -> single K = Hp + Dp dot; b_f folded into the
    # img-block row Hd (which multiplies img_feat's ones-lane).
    w_fi_p = pad2(w_fi, Hp, Hp).at[Hd, :Hd].set(b_f)
    w_fq_p = pad2(w_fq, Dp, Hp)
    w_fuse_p = jnp.concatenate([w_fi_p, w_fq_p], axis=0)             # [Hp+Dp, Hp]

    # pos carries a 1 in (unused) lane Hd so dec[:, :, Hd] == 1; b_out goes
    # into row Hd of w_out.
    pos_p = pad2(pos, S, Hp).at[:, Hd].set(1.0)
    w_out_p = pad2(w_out, Hp, Vp).at[Hd, :].set(pad2(b_out, 1, Vp)[0])

    emb_p = pad2(emb, emb.shape[0], Dp)

    return dict(
        emb_p=emb_p.astype(bf16),           # pre-padded gather table
        w_img=w_img_p.astype(bf16),
        w_fuse=w_fuse_p.astype(bf16),
        pos=pos_p.astype(f32),              # added on the VPU in f32
        w_out=w_out_p.astype(bf16),
        dims=dict(patch=patch, PD=PD, PDp=PDp, Hd=Hd, Hp=Hp,
                  D=D, Dp=Dp, S=S, V=V, Vp=Vp),
    )


# -----------------------------------------------------------------------------
# Per-call forward: minimal glue (patch extraction, one gather) + pallas_call.
# -----------------------------------------------------------------------------
def lisa_forward(imgs, qtns, consts):
    d = consts["dims"]
    patch, PD, PDp = d["patch"], d["PD"], d["PDp"]
    Dp, S, V, Vp = d["Dp"], d["S"], d["V"], d["Vp"]
    Hp = d["Hp"]

    B, C, H, W = imgs.shape
    ph = pw = patch
    assert H % ph == 0 and W % pw == 0, "image dims must be divisible by patch"
    P = (H // ph) * (W // pw)
    assert C * ph * pw == PD
    assert P % 8 == 0 and S % 8 == 0, "patch/seq counts must be sublane-aligned"
    assert qtns.shape == (B, S)

    # NCHW -> [B*P, PD] patch rows (batch folded into the matmul M dim), bf16,
    # ones-column at index PD (folds b_img), zero-padded to PDp lanes.
    patches = imgs.reshape(B, C, H // ph, ph, W // pw, pw)
    patches = patches.transpose(0, 2, 4, 1, 3, 5).reshape(B * P, PD)
    patches = patches.astype(jnp.bfloat16)
    patches = jnp.pad(patches, ((0, 0), (0, 1)), constant_values=1.0)
    patches = jnp.pad(patches, ((0, 0), (0, PDp - PD - 1)))

    # token-embedding gather from the pre-padded bf16 table (batch folded in M)
    qemb = consts["emb_p"][qtns].reshape(B * S, Dp)

    # Grid: one step for small work (no per-step overhead, full M for the MXU).
    # Only split 2-way when each half still feeds the MXU a decent M.
    # TODO(synk): on v7x at large B prefer pltpu.CORE_PARALLEL / pl.core_map so
    # the split actually lands on both TensorCores (verify in the trace).
    G = 2 if (B % 2 == 0 and (B // 2) * P >= 128 and (B // 2) * S >= 64) else 1
    BB = B // G

    kern = functools.partial(lisa_kernel, BB, P, S)

    flops = 2 * B * (P * PDp * Hp + (Hp + Dp) * Hp + S * Hp * Vp)
    bytes_accessed = (int(patches.size) + int(qemb.size)
                      + int(consts["w_img"].size) + int(consts["w_fuse"].size)
                      + int(consts["w_out"].size)) * 2 \
                     + int(consts["pos"].size) * 4 + B * S * Vp * 4

    def full(arr):  # whole-array constant block (tiny; double-buffering is moot)
        return pl.BlockSpec(arr.shape, lambda g: (0, 0))

    out_flat = pl.pallas_call(
        kern,
        out_shape=jax.ShapeDtypeStruct((B * S, Vp), jnp.float32),
        grid_spec=pltpu.PrefetchScalarGridSpec(
            num_scalar_prefetch=0,
            grid=(G,),
            in_specs=[
                pl.BlockSpec((BB * P, PDp), lambda g: (g, 0)),   # patches
                pl.BlockSpec((BB * S, Dp), lambda g: (g, 0)),    # question emb
                full(consts["w_img"]),
                full(consts["w_fuse"]),
                full(consts["pos"]),
                full(consts["w_out"]),
            ],
            out_specs=pl.BlockSpec((BB * S, Vp), lambda g: (g, 0)),
        ),
        compiler_params=pltpu.CompilerParams(
            dimension_semantics=(("arbitrary",) if G == 1 else ("parallel",))),
        cost_estimate=pl.CostEstimate(flops=flops, transcendentals=0,
                                      bytes_accessed=bytes_accessed),
    )(patches, qemb, consts["w_img"], consts["w_fuse"],
      consts["pos"], consts["w_out"])

    # lane-dense [B*S, 128] store -> [B, S, V] logits
    return out_flat.reshape(B, S, Vp)[:, :, :V]


# -----------------------------------------------------------------------------
# Pure-JAX f32 reference of the same synthetic Lisa forward (for verification).
# -----------------------------------------------------------------------------
def lisa_reference(imgs, qtns, params, *, patch=4):
    B, C, H, W = imgs.shape
    ph = pw = patch
    P = (H // ph) * (W // pw)
    patches = imgs.reshape(B, C, H // ph, ph, W // pw, pw)
    patches = patches.transpose(0, 2, 4, 1, 3, 5).reshape(B, P, C * ph * pw)
    img_h = jax.nn.relu(jnp.einsum('bpk,kh->bph', patches, params["w_img"])
                        + params["b_img"])
    img_feat = img_h.mean(axis=1)
    q_feat = params["emb"][qtns].mean(axis=1)
    fused = jax.nn.relu(img_feat @ params["w_fi"] + q_feat @ params["w_fq"]
                        + params["b_f"])
    dec = jax.nn.relu(fused[:, None, :] + params["pos"][None])
    return jnp.einsum('bsh,hv->bsv', dec, params["w_out"]) + params["b_out"]


def init_params(key, *, patch_dim=64, hidden=32, d_model=32, vocab_q=32,
                seq=8, vocab_out=32):
    ks = jax.random.split(key, 6)
    s = 0.1
    f32 = jnp.float32
    return {
        "emb":   s * jax.random.normal(ks[0], (vocab_q, d_model), f32),
        "w_img": s * jax.random.normal(ks[1], (patch_dim, hidden), f32),
        "b_img": jnp.zeros((1, hidden), f32),
        "w_fi":  s * jax.random.normal(ks[2], (hidden, hidden), f32),
        "w_fq":  s * jax.random.normal(ks[3], (d_model, hidden), f32),
        "b_f":   jnp.zeros((1, hidden), f32),
        "pos":   s * jax.random.normal(ks[4], (seq, hidden), f32),
        "w_out": s * jax.random.normal(ks[5], (hidden, vocab_out), f32),
        "b_out": jnp.zeros((1, vocab_out), f32),
    }


if __name__ == "__main__":
    key = jax.random.PRNGKey(0)
    k_img, k_q, k_p = jax.random.split(key, 3)

    B, C, Himg, Wimg = 2, 4, 16, 16      # imgs: NCHW
    S, vocab_q, vocab_out = 8, 32, 32    # qtns: [B, S] int tokens

    imgs = jax.random.normal(k_img, (B, C, Himg, Wimg), jnp.float32)
    qtns = jax.random.randint(k_q, (B, S), 0, vocab_q, dtype=jnp.int32)

    params = init_params(k_p, patch_dim=C * 4 * 4, hidden=32, d_model=32,
                         vocab_q=vocab_q, seq=S, vocab_out=vocab_out)

    # one-time constant prep (padding / bias folding / bf16) — hoisted out of
    # the per-call path per the perf review.
    consts = make_lisa_constants(params, patch=4)

    # jit the thin wrapper so the remaining glue fuses with the pallas_call.
    forward = jax.jit(lambda im, qt: lisa_forward(im, qt, consts))

    texts = jax.block_until_ready(forward(imgs, qtns))

    assert texts.shape == (B, S, vocab_out), texts.shape
    assert texts.dtype == jnp.float32

    ref = lisa_reference(imgs, qtns, params, patch=4)
    max_err = float(jnp.max(jnp.abs(texts - ref)))
    assert max_err < 5e-2, f"kernel/reference mismatch: {max_err}"

    print("KERNEL_OK")
</pallas_src>

<mosaic_0001>
module attributes {stable_mosaic.version = 11 : i64} {
  func.func @lisa_kernel(%arg0: i32, %arg1: memref<32x128xbf16, #tpu.memory_space<vmem>>, %arg2: memref<16x128xbf16, #tpu.memory_space<vmem>>, %arg3: memref<128x128xbf16, #tpu.memory_space<vmem>>, %arg4: memref<256x128xbf16, #tpu.memory_space<vmem>>, %arg5: memref<8x128xf32, #tpu.memory_space<vmem>>, %arg6: memref<128x128xbf16, #tpu.memory_space<vmem>>, %arg7: memref<16x128xf32, #tpu.memory_space<vmem>>) attributes {dimension_semantics = [#tpu.dimension_semantics<arbitrary>], iteration_bounds = array<i64: 1>, scalar_prefetch = 0 : i64, scratch_operands = 0 : i64, tpu.core_type = #tpu.core_type<tc>, window_params = [{transform_indices = @transform_0, window_bounds = array<i64: 32, 128>}, {transform_indices = @transform_1, window_bounds = array<i64: 16, 128>}, {pipeline_mode = #tpu.pipeline_mode<synchronous>, transform_indices = @transform_2, window_bounds = array<i64: 128, 128>}, {pipeline_mode = #tpu.pipeline_mode<synchronous>, transform_indices = @transform_3, window_bounds = array<i64: 256, 128>}, {pipeline_mode = #tpu.pipeline_mode<synchronous>, transform_indices = @transform_4, window_bounds = array<i64: 8, 128>}, {pipeline_mode = #tpu.pipeline_mode<synchronous>, transform_indices = @transform_5, window_bounds = array<i64: 128, 128>}, {transform_indices = @transform_6, window_bounds = array<i64: 16, 128>}]} {
    %c0 = arith.constant 0 : index
    %c0_0 = arith.constant 0 : index
    %0 = vector.load %arg1[%c0, %c0_0] : memref<32x128xbf16, #tpu.memory_space<vmem>>, vector<32x128xbf16>
    %c0_1 = arith.constant 0 : index
    %c0_2 = arith.constant 0 : index
    %1 = vector.load %arg3[%c0_1, %c0_2] : memref<128x128xbf16, #tpu.memory_space<vmem>>, vector<128x128xbf16>
    %cst = arith.constant dense<0.000000e+00> : vector<32x128xf32>
    %2 = tpu.matmul %0, %1, %cst {dimension_numbers = #tpu.dot_dimension_numbers<[1], [0], [0], [1], [0, 0, 1, 1], [], []>} : vector<32x128xbf16>, vector<128x128xbf16>, vector<32x128xf32> -> vector<32x128xf32>
    %cst_3 = arith.constant 0.000000e+00 : f32
    %3 = vector.broadcast %cst_3 : f32 to vector<32x128xf32>
    %4 = arith.maximumf %2, %3 : vector<32x128xf32>
    %5 = vector.shape_cast %4 : vector<32x128xf32> to vector<2x16x128xf32>
    %cst_4 = arith.constant dense<0.000000e+00> : vector<2x128xf32>
    %6 = vector.multi_reduction <add>, %5, %cst_4 [1] : vector<2x16x128xf32> to vector<2x128xf32>
    %cst_5 = arith.constant 6.250000e-02 : f32
    %7 = vector.broadcast %cst_5 : f32 to vector<2x128xf32>
    %8 = arith.mulf %6, %7 : vector<2x128xf32>
    %c0_6 = arith.constant 0 : index
    %c0_7 = arith.constant 0 : index
    %9 = vector.load %arg2[%c0_6, %c0_7] : memref<16x128xbf16, #tpu.memory_space<vmem>>, vector<16x128xbf16>
    %10 = arith.extf %9 : vector<16x128xbf16> to vector<16x128xf32>
    %11 = vector.shape_cast %10 : vector<16x128xf32> to vector<2x8x128xf32>
    %cst_8 = arith.constant dense<0.000000e+00> : vector<2x128xf32>
    %12 = vector.multi_reduction <add>, %11, %cst_8 [1] : vector<2x8x128xf32> to vector<2x128xf32>
    %cst_9 = arith.constant 1.250000e-01 : f32
    %13 = vector.broadcast %cst_9 : f32 to vector<2x128xf32>
    %14 = arith.mulf %12, %13 : vector<2x128xf32>
    %15 = tpu.concatenate %8, %14 in 1 : vector<2x128xf32>, vector<2x128xf32> -> vector<2x256xf32>
    %16 = arith.truncf %15 : vector<2x256xf32> to vector<2x256xbf16>
    %c0_10 = arith.constant 0 : index
    %c0_11 = arith.constant 0 : index
    %17 = vector.load %arg4[%c0_10, %c0_11] : memref<256x128xbf16, #tpu.memory_space<vmem>>, vector<256x128xbf16>
    %cst_12 = arith.constant dense<0.000000e+00> : vector<2x128xf32>
    %18 = tpu.matmul %16, %17, %cst_12 {dimension_numbers = #tpu.dot_dimension_numbers<[1], [0], [0], [1], [0, 0, 1, 1], [], []>} : vector<2x256xbf16>, vector<256x128xbf16>, vector<2x128xf32> -> vector<2x128xf32>
    %cst_13 = arith.constant 0.000000e+00 : f32
    %19 = vector.broadcast %cst_13 : f32 to vector<2x128xf32>
    %20 = arith.maximumf %18, %19 : vector<2x128xf32>
    %21 = vector.shape_cast %20 : vector<2x128xf32> to vector<2x1x128xf32>
    %c0_14 = arith.constant 0 : index
    %c0_15 = arith.constant 0 : index
    %22 = vector.load %arg5[%c0_14, %c0_15] : memref<8x128xf32, #tpu.memory_space<vmem>>, vector<8x128xf32>
    %23 = vector.shape_cast %22 : vector<8x128xf32> to vector<1x8x128xf32>
    %24 = vector.broadcast %21 : vector<2x1x128xf32> to vector<2x8x128xf32>
    %25 = vector.broadcast %23 : vector<1x8x128xf32> to vector<2x8x128xf32>
    %26 = arith.addf %24, %25 : vector<2x8x128xf32>
    %cst_16 = arith.constant 0.000000e+00 : f32
    %27 = vector.broadcast %cst_16 : f32 to vector<2x8x128xf32>
    %28 = arith.maximumf %26, %27 : vector<2x8x128xf32>
    %29 = vector.shape_cast %28 : vector<2x8x128xf32> to vector<16x128xf32>
    %30 = arith.truncf %29 : vector<16x128xf32> to vector<16x128xbf16>
    %c0_17 = arith.constant 0 : index
    %c0_18 = arith.constant 0 : index
    %31 = vector.load %arg6[%c0_17, %c0_18] : memref<128x128xbf16, #tpu.memory_space<vmem>>, vector<128x128xbf16>
    %cst_19 = arith.constant dense<0.000000e+00> : vector<16x128xf32>
    %32 = tpu.matmul %30, %31, %cst_19 {dimension_numbers = #tpu.dot_dimension_numbers<[1], [0], [0], [1], [0, 0, 1, 1], [], []>} : vector<16x128xbf16>, vector<128x128xbf16>, vector<16x128xf32> -> vector<16x128xf32>
    %c0_20 = arith.constant 0 : index
    %c0_21 = arith.constant 0 : index
    %33 = vector.load %arg7[%c0_20, %c0_21] : memref<16x128xf32, #tpu.memory_space<vmem>>, vector<16x128xf32>
    tpu.vector_store %arg7[%c0_20, %c0_21], %32 {strides = array<i32>} : memref<16x128xf32, #tpu.memory_space<vmem>>, vector<16x128xf32>,
    return
  }
  func.func @transform_0(%arg0: i32) -> (i32, i32) {
    %c0_i32 = arith.constant 0 : i32
    %c0_i32_0 = arith.constant 0 : i32
    return %arg0, %c0_i32 : i32, i32
  }
  func.func @transform_1(%arg0: i32) -> (i32, i32) {
    %c0_i32 = arith.constant 0 : i32
    %c0_i32_0 = arith.constant 0 : i32
    return %arg0, %c0_i32 : i32, i32
  }
  func.func @transform_2(%arg0: i32) -> (i32, i32) {
    %c0_i32 = arith.constant 0 : i32
    %c0_i32_0 = arith.constant 0 : i32
    %c0_i32_1 = arith.constant 0 : i32
    return %c0_i32, %c0_i32_0 : i32, i32
  }
  func.func @transform_3(%arg0: i32) -> (i32, i32) {
    %c0_i32 = arith.constant 0 : i32
    %c0_i32_0 = arith.constant 0 : i32
    %c0_i32_1 = arith.constant 0 : i32
    return %c0_i32, %c0_i32_0 : i32, i32
  }
  func.func @transform_4(%arg0: i32) -> (i32, i32) {
    %c0_i32 = arith.constant 0 : i32
    %c0_i32_0 = arith.constant 0 : i32
    %c0_i32_1 = arith.constant 0 : i32
    return %c0_i32, %c0_i32_0 : i32, i32
  }
  func.func @transform_5(%arg0: i32) -> (i32, i32) {
    %c0_i32 = arith.constant 0 : i32
    %c0_i32_0 = arith.constant 0 : i32
    %c0_i32_1 = arith.constant 0 : i32
    return %c0_i32, %c0_i32_0 : i32, i32
  }
  func.func @transform_6(%arg0: i32) -> (i32, i32) {
    %c0_i32 = arith.constant 0 : i32
    %c0_i32_0 = arith.constant 0 : i32
    return %arg0, %c0_i32 : i32, i32
  }
}

</mosaic_0001>

<bundles_post_ra>
// kernel: _lambda_.1
= control target key start
LH: loop header
LB: loop body
LE: loop exit
PB: predicated region body
PF: predicated region fallthrough
CT: control target
= control target key end

     0   :  { %s880_s0 = inlined_call_operand.vmem [shape: bf16[32,128], index: 0, kind: input, shape index: {}]   ;;  %s881_s1 = inlined_call_operand.vmem [shape: bf16[16,128], index: 1, kind: input, shape index: {}]   ;;  %s882_s2 = inlined_call_operand.vmem [shape: bf16[128,128], index: 2, kind: input, shape index: {}]   ;;  %s883_s3 = inlined_call_operand.vmem [shape: bf16[256,128], index: 3, kind: input, shape index: {}]   ;;  %s884_s4 = inlined_call_operand.vmem [shape: f32[8,128], index: 4, kind: input, shape index: {}]   ;;  %s885_s5 = inlined_call_operand.vmem [shape: bf16[128,128], index: 5, kind: input, shape index: {}]   ;;  %s886_s6 = inlined_call_operand.hbm [shape: f32[16,128], index: 6, kind: output, shape index: {}]  }
   0x1   :  { %v659_v0 = vld [vmem:[%s882_s2] sm:$0xff]   ;;  %v660_v1 = vld [vmem:[%s882_s2 + $0x8] sm:$0xff]   ;;  %v661_v2 = vld [vmem:[%s882_s2 + $0x10] sm:$0xff]  }
   0x2   :  { %613 = vmatprep.subr.bf16.mxu0 %v659_v0  ;;  %v662_v3 = vld [vmem:[%s882_s2 + $0x18] sm:$0xff]   ;;  %v667_v4 = vld [vmem:[%s880_s0] sm:$0xff]   ;;  %v671_v8 = vld [vmem:[%s883_s3 + $0x48] sm:$0xff]  }
   0x3   :  { %614 = vmatpush3.bf16.msra.mxu0 %v659_v0  ;;  %v663_v5 = vld [vmem:[%s882_s2 + $0x20] sm:$0xff]   ;;  %629 = vmatprep.mubr.bf16.mxu0 %v667_v4  ;;  %v672_v9 = vld [vmem:[%s883_s3 + $0x8] sm:$0xff]   ;;  %v665_v11 = vld [vmem:[%s882_s2 + $0x30] sm:$0xff]  }
   0x4   :  { %615 = vmatprep.subr.bf16.mxu0 %v660_v1  ;;  %v669_v6 = vld [vmem:[%s883_s3 + $0x40] sm:$0xff]   ;;  %v664_v10 = vld [vmem:[%s882_s2 + $0x28] sm:$0xff]   ;;  %v666_v12 = vld [vmem:[%s882_s2 + $0x38] sm:$0xff]  }
   0x5   :  { %v670_v7 = vld [vmem:[%s883_s3] sm:$0xff]   ;;  %582 = vmatprep.subr.bf16.mxu1 %v669_v6 }
   0x6   :  { %583 = vmatpush3.bf16.msra.mxu1 %v670_v7 }
   0x7   :  { %616 = vmatpush3.bf16.msra.mxu0 %v660_v1  ;;  %584 = vmatprep.subr.bf16.mxu1 %v671_v8 }
   0x8   :  { %617 = vmatprep.subr.bf16.mxu0 %v661_v2 }
   0xa   :  { %585 = vmatpush3.bf16.msra.mxu1 %v672_v9 }
   0xb   :  { %618 = vmatpush3.bf16.msra.mxu0 %v661_v2 }
   0xc   :  { %619 = vmatprep.subr.bf16.mxu0 %v662_v3 }
   0xf   :  { %620 = vmatpush3.bf16.msra.mxu0 %v662_v3 }
  0x10   :  { %621 = vmatprep.subr.bf16.mxu0 %v663_v5 }
  0x13   :  { %622 = vmatpush3.bf16.msra.mxu0 %v663_v5 }
  0x14   :  { %623 = vmatprep.subr.bf16.mxu0 %v664_v10 }
  0x17   :  { %624 = vmatpush3.bf16.msra.mxu0 %v664_v10 }
  0x18   :  { %625 = vmatprep.subr.bf16.mxu0 %v665_v11 }
  0x1b   :  { %626 = vmatpush3.bf16.msra.mxu0 %v665_v11 }
  0x1c   :  { %11 = vsyncpa [#allocation3], 0  ;;  %627 = vmatprep.subr.bf16.mxu0 %v666_v12  ;;  %v668_v13 = vld [vmem:[%s880_s0 + $0x8] sm:$0xff]   ;;  %v673_v14 = vld [vmem:[%s883_s3 + $0x50] sm:$0xff]   ;;  %vm194_vm0 = vcmask 1041409   ;;  %v717_v46 = vmov 0.0  }
  0x1d   :  { %v674_v15 = vld [vmem:[%s883_s3 + $0x10] sm:$0xff]   ;;  %586 = vmatprep.subr.bf16.mxu1 %v673_v14  ;;  %v675_v16 = vld [vmem:[%s883_s3 + $0x58] sm:$0xff]   ;;  %v569_v18 = vld [vmem:[%s881_s1] sm:$0xff]   ;;  %vm718_vm1 = vmmov 0   ;;  %s720_s1 = smov [#allocation2]  }
  0x1e   :  { %587 = vmatpush3.bf16.msra.mxu1 %v674_v15  ;;  %v676_v17 = vld [vmem:[%s883_s3 + $0x18] sm:$0xff]   ;;  %v570_v19 = vunpack.c.l.bf16 %v569_v18  ;;  %v571_v20 = vunpack.c.h.bf16 %v569_v18  ;;  %v677_v21 = vld [vmem:[%s883_s3 + $0x60] sm:$0xff]   ;;  %v679_v27 = vld [vmem:[%s883_s3 + $0x68] sm:$0xff]   ;;  %v376_v18 = vlaneseq  ;;  %s523_s14 = sshll.u32 %s720_s1, 4  ;;  %s524_s14 = int_to_ptr.vmem [resolvable:$true] %s523_s14 }
  0x1f   :  { %628 = vmatpush3.bf16.msra.mxu0 %v666_v12  ;;  %588 = vmatprep.subr.bf16.mxu1 %v675_v16  ;;  %v678_v24 = vld [vmem:[%s883_s3 + $0x20] sm:$0xff]   ;;  %v680_v30 = vld [vmem:[%s883_s3 + $0x28] sm:$0xff]   ;;  %v681_v33 = vld [vmem:[%s883_s3 + $0x70] sm:$0xff]   ;;  %v719_v16 = vmov 1966171168   ;;  %s693_s15 = scalar_lea.vmem %s524_s14, 256  ;;  %p698_p1 = scmp.lt.s32.totalorder %s524_s14, %s524_s14 }
  0x20   :  { %v178_v22 = vrot.slane %v570_v19, 4  ;;  %v184_v23 = vrot.slane %v571_v20, 4  ;;  %v682_v36 = vld [vmem:[%s883_s3 + $0x30] sm:$0xff]   ;;  %v683_v39 = vld [vmem:[%s883_s3 + $0x78] sm:$0xff]   ;;  %v685_v45 = vld [vmem:[%s885_s5] sm:$0xff]   ;;  %633 = vmatprep.subr.bf16.mxu0 %v717_v46  ;;  %p694_p0 = scmp.ne.s32.totalorder %s524_s14, %s693_s15  ;;  %p699_p2 = scmp.lt.s32.totalorder %s693_s15, %s693_s15 }
  0x21   :  { %v684_v40 = vld [vmem:[%s883_s3 + $0x38] sm:$0xff]   ;;  %v686_v47 = vld [vmem:[%s885_s5 + $0x8] sm:$0xff]   ;;  %v687_v48 = vld [vmem:[%s885_s5 + $0x10] sm:$0xff]  }
  0x22   :  { %630 = vmatmul.mubr.bf16.vlgmr.msra.gmra.mrb[0].mxu0 %v668_v13  ;;  %589 = vmatpush3.bf16.msra.mxu1 %v676_v17  ;;  %v179_v25 = vadd.f32 %v570_v19, %v178_v22  ;;  %v185_v26 = vadd.f32 %v571_v20, %v184_v23  ;;  %v688_v11 = vld [vmem:[%s885_s5 + $0x18] sm:$0xff]   ;;  %v689_v12 = vld [vmem:[%s885_s5 + $0x20] sm:$0xff]   ;;  %v690_v13 = vld [vmem:[%s885_s5 + $0x28] sm:$0xff]   ;;  %v374_v17 = vunpack.c.l.s4 %v719_v16  ;;  %v377_v20 = vshrl.u32 %v376_v18, 7  ;;  %p700_p3 = por %p699_p2, %p698_p1 }
  0x23   :  { %590 = vmatprep.subr.bf16.mxu1 %v677_v21  ;;  %634 = vmatpush3.bf16.msra.mxu0 %v685_v45  ;;  %v691_v14 = vld [vmem:[%s885_s5 + $0x30] sm:$0xff]   ;;  %v692_v15 = vld [vmem:[%s885_s5 + $0x38] sm:$0xff]  }
  0x24   :  { %v180_v28 = vrot.slane %v179_v25, 2  ;;  %v186_v29 = vrot.slane %v185_v26, 2  ;;  %635 = vmatprep.subr.bf16.mxu0 %v717_v46  ;;  %649 = vmatprep.mubr.msk.bf16.mxu0 %vm718_vm1, %v717_v46  ;;  %v375_v19 = vunpack.c.0.s8 %v374_v17  ;;  %p701_p4 = pnand %p700_p3, %p694_p0 }
  0x26   :  { %591 = vmatpush3.bf16.msra.mxu1 %v678_v24  ;;  %v181_v31 = vadd.f32 %v180_v28, %v179_v25  ;;  %v187_v32 = vadd.f32 %v186_v29, %v185_v26  ;;  %v378_v24 = vsub.s32 %v375_v19, %v377_v20  ;;  %v398_v29 = vsub.s32 0, %v377_v20 }
  0x27   :  { %592 = vmatprep.subr.bf16.mxu1 %v679_v27  ;;  %636 = vmatpush3.bf16.msra.mxu0 %v686_v47 }
  0x28   :  { %v182_v34 = vrot.slane %v181_v31, 1  ;;  %v188_v35 = vrot.slane %v187_v32, 1  ;;  %637 = vmatprep.subr.bf16.mxu0 %v717_v46 }
  0x2a   :  { %593 = vmatpush3.bf16.msra.mxu1 %v680_v30  ;;  %v183_v37 = vadd.f32 %v182_v34, %v181_v31  ;;  %v189_v38 = vadd.f32 %v188_v35, %v187_v32  ;;  %v395_v32 = vld [vmem:[%s884_s4] sm:$0xff] }
  0x2b   :  { %594 = vmatprep.subr.bf16.mxu1 %v681_v33  ;;  %638 = vmatpush3.bf16.msra.mxu0 %v687_v48 }
  0x2c   :  { %v190_v41 = vmul.f32 0.125, %v183_v37  ;;  %v191_v42 = vmul.f32 0.125, %v189_v38  ;;  %639 = vmatprep.subr.bf16.mxu0 %v717_v46 }
  0x2e   :  { %595 = vmatpush3.bf16.msra.mxu1 %v682_v36  ;;  %v199_v43 = vsel %vm194_vm0, %v191_v42, %v190_v41 }
  0x2f   :  { %596 = vmatprep.subr.bf16.mxu1 %v683_v39  ;;  %v202_v44 = vpack.c.bf16 %v199_v43, %v199_v43  ;;  %640 = vmatpush3.bf16.msra.mxu0 %v688_v11 }
  0x30   :  { %641 = vmatprep.subr.bf16.mxu0 %v717_v46 }
  0x31   :  { %363 = vmatprep.mubr.bf16.mxu1 %v202_v44 }
  0x32   :  { %597 = vmatpush3.bf16.msra.mxu1 %v684_v40 }
  0x33   :  { %642 = vmatpush3.bf16.msra.mxu0 %v689_v12 }
  0x34   :  { %643 = vmatprep.subr.bf16.mxu0 %v717_v46 }
  0x37   :  { %644 = vmatpush3.bf16.msra.mxu0 %v690_v13 }
  0x38   :  { %645 = vmatprep.subr.bf16.mxu0 %v717_v46 }
  0x3b   :  { %646 = vmatpush3.bf16.msra.mxu0 %v691_v14 }
  0x3c   :  { %647 = vmatprep.subr.bf16.mxu0 %v717_v46 }
  0x3f   :  { %648 = vmatpush3.bf16.msra.mxu0 %v692_v15 }
  0xf5   :  { %v631_v49 = vpop.f32.mrb[0].mxu0 }
  0xf6   :  { %v139_v50 = vpop.f32.mrb[1].mxu0  ;;  %v156_v52 = vmax.f32 %v631_v49, 0.0 }
  0xf7   :  { %v632_v51 = vpop.f32.mrb[2].mxu0  ;;  %v154_v55 = vmax.f32 %v139_v50, 0.0 }
  0xf8   :  { %v157_v53 = vmax.f32 %v632_v51, 0.0  ;;  %v142_v54 = vpop.f32.mrb[3].mxu0 }
  0xf9   :  { %v155_v56 = vmax.f32 %v142_v54, 0.0 }
  0xfa   :  { %v165_v57 = vadd.f32 %v157_v53, %v156_v52 }
  0xfb   :  { %v158_v58 = vadd.f32 %v155_v56, %v154_v55 }
  0xfc   :  { %v166_v59 = vrot.slane %v165_v57, 4 }
  0xfd   :  { %v159_v60 = vrot.slane %v158_v58, 4 }
  0xfe   :  { %v167_v61 = vadd.f32 %v166_v59, %v165_v57 }
  0xff   :  { %v160_v62 = vadd.f32 %v159_v60, %v158_v58 }
 0x100   :  { %v168_v63 = vrot.slane %v167_v61, 2 }
 0x101   :  { %v161_v0 = vrot.slane %v160_v62, 2 }
 0x102   :  { %v169_v1 = vadd.f32 %v168_v63, %v167_v61 }
 0x103   :  { %v162_v2 = vadd.f32 %v161_v0, %v160_v62 }
 0x104   :  { %v170_v3 = vrot.slane %v169_v1, 1 }
 0x105   :  { %v163_v4 = vrot.slane %v162_v2, 1 }
 0x106   :  { %v171_v5 = vadd.f32 %v170_v3, %v169_v1 }
 0x107   :  { %v164_v6 = vadd.f32 %v163_v4, %v162_v2 }
 0x108   :  { %v173_v7 = vmul.f32 0.0625, %v171_v5 }
 0x109   :  { %v172_v8 = vmul.f32 0.0625, %v164_v6 }
 0x10b   :  { %v195_v9 = vsel %vm194_vm0, %v173_v7, %v172_v8 }
 0x10c   :  { %v201_v10 = vpack.c.bf16 %v195_v9, %v195_v9 }
 0x10e   :  { %364 = vmatmul.mubr.bf16.vlgmr.msra.gmra.mrb[0].mxu1 %v201_v10 }
 0x1e1   :  { %v598_v21 = vpop.f32.mrb[0].mxu1 }
 0x1e2   :  { %v599_v22 = vpop.f32.mrb[1].mxu1 }
 0x1e3   :  { %v600_v23 = vadd.f32 %v599_v22, %v598_v21  ;;  %v601_v25 = vpop.f32.mrb[2].mxu1 }
 0x1e4   :  { %v602_v26 = vpop.f32.mrb[3].mxu1 }
 0x1e5   :  { %v371_v27 = vmax.f32 %v600_v23, 0.0 }
 0x1e7   :  { %v379_v28 = vrot.slane %v371_v27, %v378_v24 }
 0x1e9   :  { %v380_v30 = vcombine.high %v379_v28, %v379_v28  ;;  %v387_v31 = vrot.slane %v379_v28, %v378_v24 }
 0x1eb   :  { %v394_v33 = vrot.slane %v380_v30, %v378_v24  ;;  %v399_v34 = vrot.slane %v387_v31, %v398_v29 }
 0x1ed   :  { %v403_v35 = vrot.slane %v394_v33, %v398_v29  ;;  %v406_v36 = vadd.f32 %v399_v34, %v395_v32 }
 0x1ef   :  { %v407_v37 = vadd.f32 %v403_v35, %v395_v32  ;;  %v408_v38 = vmax.f32 %v406_v36, 0.0 }
 0x1f1   :  { %v409_v39 = vmax.f32 %v407_v37, 0.0 }
 0x1f3   :  { %v410_v40 = vpack.c.bf16 %v409_v39, %v408_v38 }
 0x1f5   :  { %650 = vmatmul.mubr.bf16.vlgmr.msra.gmra.mrb[4].mxu0 %v410_v40 }
 0x2c8   :  { %v509_v41 = vpop.f32.mrb[4].mxu0 }
 0x2c9   :  { %516 = vst [vmem:[#allocation2] sm:$0xff] %v509_v41  ;;  %v651_v42 = vpop.f32.mrb[5].mxu0 }
 0x2ca   :  { %v512_v43 = vpop.f32.mrb[6].mxu0 }
 0x2cb   :  { %517 = vst [vmem:[#allocation2 + $0x8] sm:$0xff] %v512_v43  ;;  %v652_v44 = vpop.f32.mrb[7].mxu0 }
 0x2cc   :  { %704 = shalt.err (!%p701_p4)
}
 0x2cd   :  { %s705_s17 = scalar_lea.hbm %s886_s6, 256 }
 0x2ce   :  { %p706_p5 = scmp.ne.s32.totalorder %s886_s6, %s705_s17  ;;  %p709_p6 = scmp.lt.u32.totalorder %s705_s17, %s886_s6 }
 0x2d0   :  { %p711_p7 = pnand %p709_p6, %p706_p5 }
 0x2d2   :  { %714 = shalt.err (!%p711_p7)
}
 0x2d3   :  { %s721_s22 = smov 128   ;;  %s722_s23 = smov 8  }
 0x2d4   :  { %529 = dma.vmem_to_hbm [thread:$0]  %s524_s14, 256, %s886_s6, [#allocation3], %s721_s22, %s721_s22, %s722_s23  }
 0x2d5   :  { %715 = dma.done.wait [#allocation3], 256  }
 0x2d6   :  { %716 = vsyncadd [#allocation3], 4294967040 }
 0x2d7   :  { %533 = vsyncpa [#allocation3], 1 }

</bundles_post_ra>
